<compile_context>
chip_gen: v6e
topology: v6e:2x2x1
jax: 0.10.0
libtpu: 0.0.40
codegen_flags: <defaults>
</compile_context>

<pallas_src>
import jax
import jax.numpy as jnp
from jax import lax
from jax.experimental import pallas as pl
from jax.experimental.pallas import tpu as pltpu


LANE = 128          # TPU lane width (output channel padding target)
MAX_TILE_M = 512    # rows per grid step; ~85% of HBM roofline per tile sweep


def _round_up(a, b):
    return (a + b - 1) // b * b


# ------------------------- Pallas kernel -------------------------------------
def _downsample_kernel(x_ref, w_ref, bias_ref, o_ref):
    # x_ref:    (TILE_M, K)  patch-matrix tile (activation dtype)
    # w_ref:    (K, Np)      conv weight with BN scale pre-folded (activation dtype)
    # bias_ref: (1, Np)      fused BN bias = beta - mean * scale   (f32)
    # o_ref:    (TILE_M, Np) output tile (activation dtype)
    acc = jnp.dot(x_ref[...], w_ref[...], preferred_element_type=jnp.float32)
    y = acc + bias_ref[...]                      # f32 epilogue (v5e-safe)
    o_ref[...] = (y * jax.nn.sigmoid(y)).astype(o_ref.dtype)   # SiLU


def _downsample_matmul(patches, w2d, bias, out_dtype, tile_m):
    Mp, K = patches.shape
    _, Np = w2d.shape
    grid = (Mp // tile_m,)

    cost = pl.CostEstimate(
        flops=2 * Mp * K * Np,
        transcendentals=Mp * Np,  # sigmoid
        bytes_accessed=(Mp * K + K * Np + Np + Mp * Np) * jnp.dtype(out_dtype).itemsize,
    )

    return pl.pallas_call(
        _downsample_kernel,
        out_shape=jax.ShapeDtypeStruct((Mp, Np), out_dtype),
        grid_spec=pltpu.PrefetchScalarGridSpec(
            num_scalar_prefetch=0,
            grid=grid,
            in_specs=[
                pl.BlockSpec((tile_m, K), lambda i: (i, 0)),   # streamed patches
                pl.BlockSpec((K, Np), lambda i: (0, 0)),       # resident weights
                pl.BlockSpec((1, Np), lambda i: (0, 0)),       # resident bias
            ],
            out_specs=pl.BlockSpec((tile_m, Np), lambda i: (i, 0)),
        ),
        compiler_params=pltpu.CompilerParams(
            # M tiles are independent -> megacore-shardable on v7x (2 TCs).
            dimension_semantics=("parallel",),
        ),
        cost_estimate=cost,
    )(patches, w2d, bias)


# ------------------------- wrapper (glue) ------------------------------------
def downsample_forward(x, conv_w, bn_gamma, bn_beta, bn_mean, bn_var,
                       scale_factor=2, eps=1e-3):
    """x: (B, C1, H, W) NCHW.  Returns (B, C2, H//s, W//s) in x.dtype."""
    k = s = scale_factor
    B, C1, H, W = x.shape
    C2 = conv_w.shape[0]
    Ho, Wo = H // s, W // s
    M = B * Ho * Wo
    K = C1 * k * k
    compute_dtype = x.dtype

    # --- space-to-depth: non-overlapping k x k patches, (C1, kh, kw) order ---
    # matches PyTorch conv weight layout (oc, ic, kh, kw).
    xp = x.reshape(B, C1, Ho, k, Wo, k)
    xp = jnp.transpose(xp, (0, 2, 4, 1, 3, 5))          # (B, Ho, Wo, C1, k, k)
    patches = xp.reshape(M, K).astype(compute_dtype)

    # --- fuse BatchNorm (inference-style running stats) ---
    scale = (bn_gamma.astype(jnp.float32)
             / jnp.sqrt(bn_var.astype(jnp.float32) + eps))          # (C2,)
    bias = (bn_beta.astype(jnp.float32)
            - bn_mean.astype(jnp.float32) * scale)                  # (C2,)

    # Fold BN scale into the weights: (x @ W) * s == x @ (W * s).
    w2d = conv_w.reshape(C2, K).T.astype(jnp.float32)               # (K, C2)
    w2d = (w2d * scale[None, :]).astype(compute_dtype)

    # --- lane-dense output: pad N = C2 up to a multiple of 128 ---
    Np = _round_up(C2, LANE)
    if Np != C2:
        w2d = jnp.pad(w2d, ((0, 0), (0, Np - C2)))
        bias = jnp.pad(bias, (0, Np - C2))
    bias = bias.reshape(1, Np).astype(jnp.float32)

    # --- tile M; pad to a multiple of the tile so blocks are always full ---
    tile_m = min(MAX_TILE_M, _round_up(M, 8))
    Mp = _round_up(M, tile_m)
    if Mp != M:
        patches = jnp.pad(patches, ((0, Mp - M), (0, 0)))

    out = _downsample_matmul(patches, w2d, bias, compute_dtype, tile_m)  # (Mp, Np)

    # Drop padding, go back to NCHW (slice fuses into the transpose under XLA).
    out = out[:M, :C2].reshape(B, Ho, Wo, C2)
    return jnp.transpose(out, (0, 3, 1, 2))                              # (B, C2, Ho, Wo)


# ------------------------- pure-JAX reference --------------------------------
def _reference(x, conv_w, bn_gamma, bn_beta, bn_mean, bn_var,
               scale_factor=2, eps=1e-3):
    s = scale_factor
    y = lax.conv_general_dilated(
        x.astype(jnp.float32), conv_w.astype(jnp.float32),
        window_strides=(s, s), padding="VALID",
        dimension_numbers=("NCHW", "OIHW", "NCHW"))
    scale = bn_gamma / jnp.sqrt(bn_var + eps)
    bias = bn_beta - bn_mean * scale
    y = y * scale[None, :, None, None] + bias[None, :, None, None]
    return y * jax.nn.sigmoid(y)


# ------------------------- main ----------------------------------------------
if __name__ == "__main__":
    B, C1, H, W = 2, 4, 16, 16
    C2 = 8
    scale_factor = 2

    key = jax.random.PRNGKey(0)
    kx, kw = jax.random.split(key)

    x = jax.random.normal(kx, (B, C1, H, W), dtype=jnp.float32)

    # Shapes follow nn.Conv2d(c1, c2, 2, 2, 0, bias=False) and
    # nn.BatchNorm2d(c2, eps=0.001, affine=True).
    conv_w = jax.random.normal(kw, (C2, C1, scale_factor, scale_factor),
                               dtype=jnp.float32) * 0.1
    bn_gamma = 1.0 + 0.01 * jnp.arange(C2, dtype=jnp.float32)
    bn_beta = 0.02 * jnp.arange(C2, dtype=jnp.float32)
    bn_mean = 0.03 * jnp.arange(C2, dtype=jnp.float32)
    bn_var = 1.0 + 0.05 * jnp.arange(C2, dtype=jnp.float32)

    out = downsample_forward(x, conv_w, bn_gamma, bn_beta, bn_mean, bn_var,
                             scale_factor=scale_factor)
    out = jax.block_until_ready(out)

    ref = _reference(x, conv_w, bn_gamma, bn_beta, bn_mean, bn_var,
                     scale_factor=scale_factor)
    assert out.shape == (B, C2, H // scale_factor, W // scale_factor)
    assert jnp.allclose(out, ref, atol=1e-4, rtol=1e-4)

    print("KERNEL_OK")
</pallas_src>

<mosaic_0001>
module attributes {stable_mosaic.version = 11 : i64} {
  func.func @_downsample_kernel(%arg0: i32, %arg1: memref<128x16xf32, #tpu.memory_space<vmem>>, %arg2: memref<16x128xf32, #tpu.memory_space<vmem>>, %arg3: memref<1x128xf32, #tpu.memory_space<vmem>>, %arg4: memref<128x128xf32, #tpu.memory_space<vmem>>) attributes {dimension_semantics = [#tpu.dimension_semantics<parallel>], iteration_bounds = array<i64: 1>, scalar_prefetch = 0 : i64, scratch_operands = 0 : i64, tpu.core_type = #tpu.core_type<tc>, window_params = [{transform_indices = @transform_0, window_bounds = array<i64: 128, 16>}, {pipeline_mode = #tpu.pipeline_mode<synchronous>, transform_indices = @transform_1, window_bounds = array<i64: 16, 128>}, {pipeline_mode = #tpu.pipeline_mode<synchronous>, transform_indices = @transform_2, window_bounds = array<i64: 1, 128>}, {transform_indices = @transform_3, window_bounds = array<i64: 128, 128>}]} {
    %c0 = arith.constant 0 : index
    %c0_0 = arith.constant 0 : index
    %0 = vector.load %arg1[%c0, %c0_0] : memref<128x16xf32, #tpu.memory_space<vmem>>, vector<128x16xf32>
    %c0_1 = arith.constant 0 : index
    %c0_2 = arith.constant 0 : index
    %1 = vector.load %arg2[%c0_1, %c0_2] : memref<16x128xf32, #tpu.memory_space<vmem>>, vector<16x128xf32>
    %cst = arith.constant dense<0.000000e+00> : vector<128x128xf32>
    %2 = tpu.matmul %0, %1, %cst {dimension_numbers = #tpu.dot_dimension_numbers<[1], [0], [0], [1], [0, 0, 1, 1], [], []>} : vector<128x16xf32>, vector<16x128xf32>, vector<128x128xf32> -> vector<128x128xf32>
    %c0_3 = arith.constant 0 : index
    %c0_4 = arith.constant 0 : index
    %3 = vector.load %arg3[%c0_3, %c0_4] : memref<1x128xf32, #tpu.memory_space<vmem>>, vector<1x128xf32>
    %4 = vector.broadcast %3 : vector<1x128xf32> to vector<128x128xf32>
    %5 = arith.addf %2, %4 : vector<128x128xf32>
    %6 = arith.negf %5 : vector<128x128xf32>
    %7 = math.exp %6 : vector<128x128xf32>
    %cst_5 = arith.constant 1.000000e+00 : f32
    %8 = vector.broadcast %cst_5 : f32 to vector<128x128xf32>
    %9 = arith.addf %8, %7 : vector<128x128xf32>
    %10 = arith.divf %8, %9 : vector<128x128xf32>
    %11 = arith.mulf %5, %10 : vector<128x128xf32>
    %c0_6 = arith.constant 0 : index
    %c0_7 = arith.constant 0 : index
    %12 = vector.load %arg4[%c0_6, %c0_7] : memref<128x128xf32, #tpu.memory_space<vmem>>, vector<128x128xf32>
    tpu.vector_store %arg4[%c0_6, %c0_7], %11 {strides = array<i32>} : memref<128x128xf32, #tpu.memory_space<vmem>>, vector<128x128xf32>,
    return
  }
  func.func @transform_0(%arg0: i32) -> (i32, i32) {
    %c0_i32 = arith.constant 0 : i32
    %c0_i32_0 = arith.constant 0 : i32
    return %arg0, %c0_i32 : i32, i32
  }
  func.func @transform_1(%arg0: i32) -> (i32, i32) {
    %c0_i32 = arith.constant 0 : i32
    %c0_i32_0 = arith.constant 0 : i32
    %c0_i32_1 = arith.constant 0 : i32
    return %c0_i32, %c0_i32_0 : i32, i32
  }
  func.func @transform_2(%arg0: i32) -> (i32, i32) {
    %c0_i32 = arith.constant 0 : i32
    %c0_i32_0 = arith.constant 0 : i32
    %c0_i32_1 = arith.constant 0 : i32
    return %c0_i32, %c0_i32_0 : i32, i32
  }
  func.func @transform_3(%arg0: i32) -> (i32, i32) {
    %c0_i32 = arith.constant 0 : i32
    %c0_i32_0 = arith.constant 0 : i32
    return %arg0, %c0_i32 : i32, i32
  }
}

</mosaic_0001>

<bundles_post_ra>
// kernel: tpu_custom_call.1
= control target key start
LH: loop header
LB: loop body
LE: loop exit
PB: predicated region body
PF: predicated region fallthrough
CT: control target
= control target key end

     0   :  { %vm40_vm0 = vcmask 130048   ;;  %s713_s0 = inlined_call_operand.vmem [shape: f32[128,16], index: 0, kind: input, shape index: {}]   ;;  %s714_s1 = inlined_call_operand.vmem [shape: f32[16,128], index: 1, kind: input, shape index: {}]   ;;  %s715_s2 = inlined_call_operand.vmem [shape: f32[1,128], index: 2, kind: input, shape index: {}]   ;;  %s716_s3 = inlined_call_operand.hbm [shape: f32[128,128], index: 3, kind: output, shape index: {}]  }
   0x1   :  { %v32_v0 = vld [vmem:[%s714_s1 + $0x8] sm:$0xff]  ;;  %v31_v1 = vld [vmem:[%s714_s1] sm:$0xff]  ;;  %v17_v6 = vld [vmem:[%s713_s0 + $0x10] sm:$0xff] }
   0x2   :  { %429 = vmatprep.subr.mxu0 %v32_v0  ;;  %457 = vmatprep.subr.mxu1 %v32_v0  ;;  %v15_v2 = vld [vmem:[%s713_s0] sm:$0xff]  ;;  %v16_v4 = vld [vmem:[%s713_s0 + $0x8] sm:$0xff]  ;;  %v25_v7 = vld [vmem:[%s713_s0 + $0x50] sm:$0xff] }
   0x3   :  { %430 = vmatpush3.msra.mxu0 %v32_v0  ;;  %459 = vmatpush3.msra.mxu1 %v32_v0  ;;  %v23_v3 = vld [vmem:[%s713_s0 + $0x40] sm:$0xff]  ;;  %v24_v5 = vld [vmem:[%s713_s0 + $0x48] sm:$0xff] }
   0x4   :  { %431 = vmatprep.subr.mxu0 %v31_v1  ;;  %458 = vmatprep.subr.mxu1 %v31_v1 }
   0x5   :  { %432 = vmatpush3.msra.mxu0 %v31_v1  ;;  %460 = vmatpush3.msra.mxu1 %v31_v1 }
   0x6   :  { %433 = vmatprep.mubr.msk.f32.mxu0 %vm40_vm0, %v15_v2  ;;  %445 = vmatprep.mubr.msk.f32.mxu1 %vm40_vm0, %v23_v3 }
   0x7   :  { %434 = vmatmul.mubr.msk.f32.vlgmr.msra.gmra.mxu0 %vm40_vm0, %v16_v4  ;;  %446 = vmatmul.mubr.msk.f32.vlgmr.msra.gmra.mxu1 %vm40_vm0, %v24_v5 }
   0x8   :  { %8 = vsyncpa [#allocation3], 0  ;;  %436 = vmatprep.mubr.msk.f32.mxu0 %vm40_vm0, %v17_v6  ;;  %448 = vmatprep.mubr.msk.f32.mxu1 %vm40_vm0, %v25_v7  ;;  %v18_v8 = vld [vmem:[%s713_s0 + $0x18] sm:$0xff]  ;;  %v19_v10 = vld [vmem:[%s713_s0 + $0x20] sm:$0xff] }
   0x9   :  { %v26_v9 = vld [vmem:[%s713_s0 + $0x58] sm:$0xff]  ;;  %v27_v11 = vld [vmem:[%s713_s0 + $0x60] sm:$0xff]  ;;  %v20_v12 = vld [vmem:[%s713_s0 + $0x28] sm:$0xff] }
   0xa   :  { %v28_v13 = vld [vmem:[%s713_s0 + $0x68] sm:$0xff]  ;;  %v21_v14 = vld [vmem:[%s713_s0 + $0x30] sm:$0xff]  ;;  %v22_v16 = vld [vmem:[%s713_s0 + $0x38] sm:$0xff] }
   0xb   :  { %437 = vmatmul.mubr.msk.f32.gmra.mxu0 %vm40_vm0, %v18_v8  ;;  %449 = vmatmul.mubr.msk.f32.gmra.mxu1 %vm40_vm0, %v26_v9  ;;  %v29_v15 = vld [vmem:[%s713_s0 + $0x70] sm:$0xff]  ;;  %v30_v17 = vld [vmem:[%s713_s0 + $0x78] sm:$0xff]  ;;  %v378_v18 = vld [vmem:[%s715_s2] ss:$0 sm:$0xff]  ;;  %s550_s0 = smov [#allocation2]  }
   0xc   :  { %439 = vmatprep.mubr.msk.f32.mxu0 %vm40_vm0, %v19_v10  ;;  %451 = vmatprep.mubr.msk.f32.mxu1 %vm40_vm0, %v27_v11  ;;  %s367_s2 = sshll.u32 %s550_s0, 4  ;;  %s368_s2 = int_to_ptr.vmem [resolvable:$true] %s367_s2 }
   0xd   :  { %s528_s1 = scalar_lea.vmem %s368_s2, 2048  ;;  %p533_p1 = scmp.lt.s32.totalorder %s368_s2, %s368_s2 }
   0xe   :  { %p529_p0 = scmp.ne.s32.totalorder %s368_s2, %s528_s1  ;;  %p534_p2 = scmp.lt.s32.totalorder %s528_s1, %s528_s1 }
   0xf   :  { %440 = vmatmul.mubr.msk.f32.gmra.mxu0 %vm40_vm0, %v20_v12  ;;  %452 = vmatmul.mubr.msk.f32.gmra.mxu1 %vm40_vm0, %v28_v13 }
  0x10   :  { %442 = vmatprep.mubr.msk.f32.mxu0 %vm40_vm0, %v21_v14  ;;  %454 = vmatprep.mubr.msk.f32.mxu1 %vm40_vm0, %v29_v15  ;;  %p535_p3 = por %p534_p2, %p533_p1 }
  0x12   :  { %p536_p4 = pnand %p535_p3, %p529_p0 }
  0x13   :  { %443 = vmatmul.mubr.msk.f32.gmra.mxu0 %vm40_vm0, %v22_v16  ;;  %455 = vmatmul.mubr.msk.f32.gmra.mxu1 %vm40_vm0, %v30_v17 }
  0xc7   :  { %v435_v19 = vpop.f32.mrf.mxu0  ;;  %v447_v20 = vpop.f32.mrf.mxu1 }
  0xc8   :  { %v646_v21 = vadd.f32 %v435_v19, %v378_v18  ;;  %v648_v22 = vadd.f32 %v447_v20, %v378_v18 }
  0xc9   :  { %v155_v23 = vpop.f32.mrf.mxu0  ;;  %v195_v24 = vpop.f32.mrf.mxu1 }
  0xca   :  { %v396_v25 = vmul.f32 -1.442695, %v646_v21  ;;  %v404_v26 = vmul.f32 -1.442695, %v648_v22  ;;  %v652_v27 = vadd.f32 %v378_v18, %v155_v23  ;;  %v654_v28 = vadd.f32 %v378_v18, %v195_v24 }
  0xcb   :  { %v438_v29 = vpop.f32.mrf.mxu0  ;;  %v450_v30 = vpop.f32.mrf.mxu1 }
  0xcc   :  { %464 = vpow2.f32 %v396_v25  ;;  %v395_v31 = vmul.f32 -1.442695, %v652_v27  ;;  %v403_v32 = vmul.f32 -1.442695, %v654_v28  ;;  %v658_v33 = vadd.f32 %v438_v29, %v378_v18 }
  0xcd   :  { %466 = vpow2.f32 %v404_v26  ;;  %v660_v34 = vadd.f32 %v450_v30, %v378_v18  ;;  %v165_v35 = vpop.f32.mrf.mxu0  ;;  %v205_v36 = vpop.f32.mrf.mxu1 }
  0xce   :  { %468 = vpow2.f32 %v395_v31  ;;  %v398_v37 = vmul.f32 -1.442695, %v658_v33  ;;  %v663_v38 = vadd.f32 %v378_v18, %v165_v35  ;;  %v665_v39 = vadd.f32 %v378_v18, %v205_v36 }
  0xcf   :  { %470 = vpow2.f32 %v403_v32  ;;  %v406_v40 = vmul.f32 -1.442695, %v660_v34  ;;  %v441_v41 = vpop.f32.mrf.mxu0  ;;  %v453_v42 = vpop.f32.mrf.mxu1 }
  0xd0   :  { %472 = vpow2.f32 %v398_v37  ;;  %v397_v43 = vmul.f32 -1.442695, %v663_v38  ;;  %v405_v44 = vmul.f32 -1.442695, %v665_v39  ;;  %v670_v45 = vadd.f32 %v441_v41, %v378_v18 }
  0xd1   :  { %474 = vpow2.f32 %v406_v40  ;;  %v672_v46 = vadd.f32 %v453_v42, %v378_v18  ;;  %v175_v47 = vpop.f32.mrf.mxu0  ;;  %v215_v48 = vpop.f32.mrf.mxu1 }
  0xd2   :  { %476 = vpow2.f32 %v397_v43  ;;  %v400_v49 = vmul.f32 -1.442695, %v670_v45  ;;  %v675_v50 = vadd.f32 %v378_v18, %v175_v47  ;;  %v677_v51 = vadd.f32 %v378_v18, %v215_v48 }
  0xd3   :  { %478 = vpow2.f32 %v405_v44  ;;  %v408_v52 = vmul.f32 -1.442695, %v672_v46  ;;  %v444_v53 = vpop.f32.mrf.mxu0  ;;  %v456_v54 = vpop.f32.mrf.mxu1 }
  0xd4   :  { %480 = vpow2.f32 %v400_v49  ;;  %v399_v55 = vmul.f32 -1.442695, %v675_v50  ;;  %v407_v56 = vmul.f32 -1.442695, %v677_v51  ;;  %v682_v57 = vadd.f32 %v444_v53, %v378_v18 }
  0xd5   :  { %482 = vpow2.f32 %v408_v52  ;;  %v684_v58 = vadd.f32 %v456_v54, %v378_v18  ;;  %v185_v59 = vpop.f32.mrf.mxu0  ;;  %v225_v60 = vpop.f32.mrf.mxu1 }
  0xd6   :  { %484 = vpow2.f32 %v399_v55  ;;  %v402_v61 = vmul.f32 -1.442695, %v682_v57  ;;  %v687_v62 = vadd.f32 %v378_v18, %v185_v59  ;;  %v689_v63 = vadd.f32 %v378_v18, %v225_v60 }
  0xd7   :  { %486 = vpow2.f32 %v407_v56  ;;  %v410_v0 = vmul.f32 -1.442695, %v684_v58 }
  0xd8   :  { %488 = vpow2.f32 %v402_v61  ;;  %v401_v1 = vmul.f32 -1.442695, %v687_v62  ;;  %v409_v2 = vmul.f32 -1.442695, %v689_v63 }
  0xd9   :  { %v465_v3 = vpop.eup %464  ;;  %490 = vpow2.f32 %v410_v0 }
  0xda   :  { %v467_v4 = vpop.eup %466  ;;  %v283_v5 = vadd.f32 1.0, %v465_v3  ;;  %492 = vpow2.f32 %v401_v1 }
  0xdb   :  { %v469_v6 = vpop.eup %468  ;;  %v291_v7 = vadd.f32 1.0, %v467_v4  ;;  %494 = vpow2.f32 %v409_v2 }
  0xdc   :  { %v471_v8 = vpop.eup %470  ;;  %496 = vrcp.f32 %v283_v5  ;;  %v282_v9 = vadd.f32 1.0, %v469_v6 }
  0xdd   :  { %v473_v10 = vpop.eup %472  ;;  %498 = vrcp.f32 %v291_v7  ;;  %v290_v11 = vadd.f32 1.0, %v471_v8 }
  0xde   :  { %v475_v12 = vpop.eup %474  ;;  %500 = vrcp.f32 %v282_v9  ;;  %v285_v13 = vadd.f32 1.0, %v473_v10 }
  0xdf   :  { %v477_v14 = vpop.eup %476  ;;  %502 = vrcp.f32 %v290_v11  ;;  %v293_v15 = vadd.f32 1.0, %v475_v12 }
  0xe0   :  { %v479_v16 = vpop.eup %478  ;;  %504 = vrcp.f32 %v285_v13  ;;  %v284_v17 = vadd.f32 1.0, %v477_v14 }
  0xe1   :  { %v481_v18 = vpop.eup %480  ;;  %506 = vrcp.f32 %v293_v15  ;;  %v292_v19 = vadd.f32 1.0, %v479_v16 }
  0xe2   :  { %v483_v20 = vpop.eup %482  ;;  %508 = vrcp.f32 %v284_v17  ;;  %v287_v23 = vadd.f32 1.0, %v481_v18 }
  0xe3   :  { %v485_v24 = vpop.eup %484  ;;  %510 = vrcp.f32 %v292_v19  ;;  %v295_v25 = vadd.f32 1.0, %v483_v20 }
  0xe4   :  { %v487_v26 = vpop.eup %486  ;;  %512 = vrcp.f32 %v287_v23  ;;  %v286_v29 = vadd.f32 1.0, %v485_v24 }
  0xe5   :  { %v489_v30 = vpop.eup %488  ;;  %514 = vrcp.f32 %v295_v25  ;;  %v294_v31 = vadd.f32 1.0, %v487_v26 }
  0xe6   :  { %v491_v32 = vpop.eup %490  ;;  %516 = vrcp.f32 %v286_v29  ;;  %v289_v35 = vadd.f32 1.0, %v489_v30 }
  0xe7   :  { %v493_v36 = vpop.eup %492  ;;  %518 = vrcp.f32 %v294_v31  ;;  %v297_v37 = vadd.f32 1.0, %v491_v32 }
  0xe8   :  { %v495_v40 = vpop.eup %494  ;;  %520 = vrcp.f32 %v289_v35  ;;  %v288_v41 = vadd.f32 1.0, %v493_v36 }
  0xe9   :  { %v497_v42 = vpop.eup %496  ;;  %522 = vrcp.f32 %v297_v37  ;;  %v296_v43 = vadd.f32 1.0, %v495_v40 }
  0xea   :  { %v499_v44 = vpop.eup %498  ;;  %v331_v47 = vmul.f32 %v497_v42, %v646_v21  ;;  %524 = vrcp.f32 %v288_v41 }
  0xeb   :  { %v501_v48 = vpop.eup %500  ;;  %v339_v49 = vmul.f32 %v499_v44, %v648_v22  ;;  %526 = vrcp.f32 %v296_v43 }
  0xec   :  { %v503_v52 = vpop.eup %502  ;;  %347 = vst [vmem:[#allocation2 + $0x8] sm:$0xff] %v331_v47  ;;  %v330_v53 = vmul.f32 %v501_v48, %v652_v27 }
  0xed   :  { %v505_v54 = vpop.eup %504  ;;  %355 = vst [vmem:[#allocation2 + $0x48] sm:$0xff] %v339_v49  ;;  %v338_v55 = vmul.f32 %v503_v52, %v654_v28 }
  0xee   :  { %v507_v56 = vpop.eup %506  ;;  %346 = vst [vmem:[#allocation2] sm:$0xff] %v330_v53  ;;  %v333_v59 = vmul.f32 %v505_v54, %v658_v33 }
  0xef   :  { %v509_v60 = vpop.eup %508  ;;  %354 = vst [vmem:[#allocation2 + $0x40] sm:$0xff] %v338_v55  ;;  %v341_v21 = vmul.f32 %v507_v56, %v660_v34 }
  0xf0   :  { %v511_v61 = vpop.eup %510  ;;  %349 = vst [vmem:[#allocation2 + $0x18] sm:$0xff] %v333_v59  ;;  %v332_v22 = vmul.f32 %v509_v60, %v663_v38 }
  0xf1   :  { %v513_v0 = vpop.eup %512  ;;  %357 = vst [vmem:[#allocation2 + $0x58] sm:$0xff] %v341_v21  ;;  %v340_v27 = vmul.f32 %v511_v61, %v665_v39 }
  0xf2   :  { %v515_v1 = vpop.eup %514  ;;  %348 = vst [vmem:[#allocation2 + $0x10] sm:$0xff] %v332_v22  ;;  %v335_v28 = vmul.f32 %v513_v0, %v670_v45 }
  0xf3   :  { %v517_v2 = vpop.eup %516  ;;  %356 = vst [vmem:[#allocation2 + $0x50] sm:$0xff] %v340_v27  ;;  %v343_v33 = vmul.f32 %v515_v1, %v672_v46 }
  0xf4   :  { %v519_v3 = vpop.eup %518  ;;  %351 = vst [vmem:[#allocation2 + $0x28] sm:$0xff] %v335_v28  ;;  %v334_v34 = vmul.f32 %v517_v2, %v675_v50 }
  0xf5   :  { %v521_v4 = vpop.eup %520  ;;  %359 = vst [vmem:[#allocation2 + $0x68] sm:$0xff] %v343_v33  ;;  %v342_v38 = vmul.f32 %v519_v3, %v677_v51 }
  0xf6   :  { %v523_v5 = vpop.eup %522  ;;  %350 = vst [vmem:[#allocation2 + $0x20] sm:$0xff] %v334_v34  ;;  %v337_v39 = vmul.f32 %v521_v4, %v682_v57 }
  0xf7   :  { %v525_v6 = vpop.eup %524  ;;  %358 = vst [vmem:[#allocation2 + $0x60] sm:$0xff] %v342_v38  ;;  %v345_v45 = vmul.f32 %v523_v5, %v684_v58 }
  0xf8   :  { %v527_v7 = vpop.eup %526  ;;  %353 = vst [vmem:[#allocation2 + $0x38] sm:$0xff] %v337_v39  ;;  %v336_v46 = vmul.f32 %v525_v6, %v687_v62 }
  0xf9   :  { %361 = vst [vmem:[#allocation2 + $0x78] sm:$0xff] %v345_v45  ;;  %v344_v50 = vmul.f32 %v527_v7, %v689_v63 }
  0xfa   :  { %352 = vst [vmem:[#allocation2 + $0x30] sm:$0xff] %v336_v46 }
  0xfb   :  { %360 = vst [vmem:[#allocation2 + $0x70] sm:$0xff] %v344_v50 }
  0xfc   :  { %539 = shalt.err (!%p536_p4)
}
  0xfd   :  { %s551_s22 = smov 128   ;;  %s552_s23 = smov 8  }
  0xfe   :  { %373 = dma.vmem_to_hbm [thread:$0]  %s368_s2, 2048, %s716_s3, [#allocation3], %s551_s22, %s551_s22, %s552_s23  }
  0xff   :  { %548 = dma.done.wait [#allocation3], 2048  }
 0x100   :  { %549 = vsyncadd [#allocation3], 4294965248 }
 0x101   :  { %377 = vsyncpa [#allocation3], 1 }

</bundles_post_ra>
